<compile_context>
chip_gen: v6e
topology: v6e:2x2x1
jax: 0.10.0
libtpu: 0.0.40
codegen_flags: <defaults>
</compile_context>

<pallas_src>
from functools import partial

import jax
import jax.numpy as jnp
import numpy as np
from jax.experimental import pallas as pl
from jax.experimental.pallas import tpu as pltpu


def basic_block_kernel(x_ref, w1_ref, w2_ref, mask_ref, b1_ref, b2_ref,
                       out_ref, taps_ref, *, C, H, W):
    """Fused conv3x3 -> BN -> ReLU -> conv3x3 -> BN -> +identity -> ReLU.

    x_ref   : (C, H*W)   lane-dense input slab (f32); also the residual
    w1_ref  : (C, 9*C)   conv1 weights with BN1 scale folded in (bf16)
    w2_ref  : (C, 9*C)   conv2 weights with BN2 scale folded in (bf16)
    mask_ref: (9, H*W)   per-tap 0/1 boundary masks (f32), batch-invariant
    b1/b2   : (C, 1)     folded BN shifts (f32)
    out_ref : (C, H*W)
    taps_ref: (9*C, H*W) bf16 scratch holding the 9 shifted taps; reused by
                         both convs so each conv is a single MXU contraction.
    """
    HW = H * W

    def stage_taps(src):
        # src: (C, HW) f32 value in vregs.  Tap (dy, dx) is the flattened
        # image shifted by delta = (dy-1)*W + (dx-1); the shift is an XLU
        # lane rotation and the lanes that wrapped across an image / row
        # boundary are zeroed by the precomputed masks.  Taps are stored
        # bf16 so the conv becomes one bf16 MXU contraction with K = 9*C.
        for dy in range(3):
            for dx in range(3):
                k = dy * 3 + dx
                delta = (dy - 1) * W + (dx - 1)
                tap = src if delta == 0 else pltpu.roll(src, (-delta) % HW, axis=1)
                if k != 4:                      # centre tap needs no mask
                    tap = tap * mask_ref[k:k + 1, :]
                taps_ref[k * C:(k + 1) * C, :] = tap.astype(jnp.bfloat16)

    x = x_ref[...]                              # (C, HW) f32

    # ---- conv1 (one MXU dot, K = 9*C) + bn1 (scale folded) + relu ----------
    stage_taps(x)
    mid = jnp.dot(w1_ref[...], taps_ref[...], preferred_element_type=jnp.float32)
    mid = jnp.maximum(mid + b1_ref[...], 0.0)

    # ---- conv2 (one MXU dot) + bn2 (scale folded) + residual + relu --------
    stage_taps(mid)
    acc = jnp.dot(w2_ref[...], taps_ref[...], preferred_element_type=jnp.float32)
    out_ref[...] = jnp.maximum(acc + b2_ref[...] + x, 0.0)


def basic_block(x, w1, g1, beta1, m1, v1, w2, g2, beta2, m2, v2, eps=1e-5):
    """JAX wrapper: folds BN into weights/shifts, builds lane-dense layout
    and boundary masks, launches one fused kernel per batch element."""
    N, Cin, H, W = x.shape
    Cmid = w1.shape[0]
    # stride=1 / downsample=None path requires inplanes == planes.
    assert Cin == Cmid, "identity residual needs inplanes == planes"
    HW = H * W

    x = x.astype(jnp.float32)

    # Fold eval-mode BatchNorm into per-channel scale/shift; fold the scale
    # into the conv weights (tiny weight-side op, constant under jit).
    s1 = g1 / jnp.sqrt(v1 + eps)
    b1 = beta1 - m1 * s1
    s2 = g2 / jnp.sqrt(v2 + eps)
    b2 = beta2 - m2 * s2

    # (O, I, ky, kx) -> (O, ky, kx, I) -> (O, 9*I); column k*I + ci matches the
    # kernel's taps row ordering (k = dy*3 + dx).  BN scale on the O rows.
    w1f = (jnp.transpose(w1.astype(jnp.float32), (0, 2, 3, 1)).reshape(Cmid, 9 * Cin)
           * s1[:, None]).astype(jnp.bfloat16)
    w2f = (jnp.transpose(w2.astype(jnp.float32), (0, 2, 3, 1)).reshape(Cmid, 9 * Cmid)
           * s2[:, None]).astype(jnp.bfloat16)

    # Per-tap boundary masks (batch/channel invariant -> hoisted out of the
    # kernel).  Row masks handle the +/-W shifts, col masks the +/-1 shifts;
    # together they zero every lane the in-kernel roll wraps around.
    h_idx = jnp.arange(HW, dtype=jnp.int32) // W
    w_idx = jnp.arange(HW, dtype=jnp.int32) % W
    ones = jnp.ones((HW,), dtype=jnp.bool_)
    row_m = [h_idx >= 1, ones, h_idx <= H - 2]
    col_m = [w_idx >= 1, ones, w_idx <= W - 2]
    masks = jnp.stack([row_m[dy] & col_m[dx]
                       for dy in range(3) for dx in range(3)]).astype(jnp.float32)

    x_flat = x.reshape(N, Cin, HW)              # lane-dense activations

    kernel = partial(basic_block_kernel, C=Cmid, H=H, W=W)

    out_flat = pl.pallas_call(
        kernel,
        out_shape=jax.ShapeDtypeStruct((N, Cmid, HW), jnp.float32),
        grid=(N,),
        in_specs=[
            pl.BlockSpec((None, Cin, HW), lambda n: (n, 0, 0)),
            pl.BlockSpec((Cmid, 9 * Cin), lambda n: (0, 0)),
            pl.BlockSpec((Cmid, 9 * Cmid), lambda n: (0, 0)),
            pl.BlockSpec((9, HW), lambda n: (0, 0)),
            pl.BlockSpec((Cmid, 1), lambda n: (0, 0)),
            pl.BlockSpec((Cmid, 1), lambda n: (0, 0)),
        ],
        out_specs=pl.BlockSpec((None, Cmid, HW), lambda n: (n, 0, 0)),
        scratch_shapes=[pltpu.VMEM((9 * Cmid, HW), jnp.bfloat16)],
        compiler_params=pltpu.CompilerParams(
            dimension_semantics=("parallel",)),
    )(x_flat, w1f, w2f, masks,
      b1.astype(jnp.float32).reshape(Cmid, 1),
      b2.astype(jnp.float32).reshape(Cmid, 1))

    return out_flat.reshape(N, Cmid, H, W)


def reference(x, w1, g1, beta1, m1, v1, w2, g2, beta2, m2, v2, eps=1e-5):
    """Pure-JAX reference (eval-mode BN), NCHW / OIHW like PyTorch."""
    def conv3x3(a, w):
        return jax.lax.conv_general_dilated(
            a, w, window_strides=(1, 1), padding=((1, 1), (1, 1)),
            dimension_numbers=("NCHW", "OIHW", "NCHW"),
            precision=jax.lax.Precision.HIGHEST)

    def bn(a, g, b, m, v):
        return (a - m[None, :, None, None]) / jnp.sqrt(v[None, :, None, None] + eps) \
            * g[None, :, None, None] + b[None, :, None, None]

    out = jnp.maximum(bn(conv3x3(x, w1), g1, beta1, m1, v1), 0.0)
    out = bn(conv3x3(out, w2), g2, beta2, m2, v2)
    return jnp.maximum(out + x, 0.0)


if __name__ == "__main__":
    key = jax.random.PRNGKey(0)
    N, C, H, W = 2, 4, 16, 16          # inplanes = planes = 4, stride = 1
    planes = C

    keys = jax.random.split(key, 12)
    x = jax.random.normal(keys[0], (N, C, H, W), jnp.float32)

    # conv weights (OIHW, bias=False), deterministic init
    w1 = 0.2 * jax.random.normal(keys[1], (planes, C, 3, 3), jnp.float32)
    w2 = 0.2 * jax.random.normal(keys[2], (planes, planes, 3, 3), jnp.float32)

    # BatchNorm parameters + running stats (eval mode)
    g1 = 1.0 + 0.1 * jax.random.normal(keys[3], (planes,), jnp.float32)
    beta1 = 0.1 * jax.random.normal(keys[4], (planes,), jnp.float32)
    m1 = 0.1 * jax.random.normal(keys[5], (planes,), jnp.float32)
    v1 = 0.5 + jnp.abs(jax.random.normal(keys[6], (planes,), jnp.float32))

    g2 = 1.0 + 0.1 * jax.random.normal(keys[7], (planes,), jnp.float32)
    beta2 = 0.1 * jax.random.normal(keys[8], (planes,), jnp.float32)
    m2 = 0.1 * jax.random.normal(keys[9], (planes,), jnp.float32)
    v2 = 0.5 + jnp.abs(jax.random.normal(keys[10], (planes,), jnp.float32))

    run = jax.jit(basic_block)
    out = jax.block_until_ready(
        run(x, w1, g1, beta1, m1, v1, w2, g2, beta2, m2, v2))

    ref = jax.block_until_ready(
        reference(x, w1, g1, beta1, m1, v1, w2, g2, beta2, m2, v2))

    assert out.shape == (N, planes, H, W), out.shape
    # Tolerance covers bf16 MXU operands (f32 accumulation): worst-case error
    # at these magnitudes is ~1e-2; any logic error (wrong tap/mask/BN fold)
    # would be O(0.1) or larger and still fail.
    np.testing.assert_allclose(np.asarray(out), np.asarray(ref),
                               rtol=2e-2, atol=2e-2)
    print("KERNEL_OK")
</pallas_src>

<mosaic_0001>
module attributes {stable_mosaic.version = 11 : i64} {
  func.func @basic_block_kernel(%arg0: i32, %arg1: memref<1x4x256xf32, #tpu.memory_space<vmem>>, %arg2: memref<4x36xbf16, #tpu.memory_space<vmem>>, %arg3: memref<4x36xbf16, #tpu.memory_space<vmem>>, %arg4: memref<9x256xf32, #tpu.memory_space<vmem>>, %arg5: memref<4x1xf32, #tpu.memory_space<vmem>>, %arg6: memref<4x1xf32, #tpu.memory_space<vmem>>, %arg7: memref<1x4x256xf32, #tpu.memory_space<vmem>>, %arg8: memref<36x256xbf16, #tpu.memory_space<vmem>>) attributes {dimension_semantics = [#tpu.dimension_semantics<parallel>], iteration_bounds = array<i64: 2>, scalar_prefetch = 0 : i64, scratch_operands = 1 : i64, tpu.core_type = #tpu.core_type<tc>, window_params = [{transform_indices = @transform_0, window_bounds = array<i64: 1, 4, 256>}, {pipeline_mode = #tpu.pipeline_mode<synchronous>, transform_indices = @transform_1, window_bounds = array<i64: 4, 36>}, {pipeline_mode = #tpu.pipeline_mode<synchronous>, transform_indices = @transform_2, window_bounds = array<i64: 4, 36>}, {pipeline_mode = #tpu.pipeline_mode<synchronous>, transform_indices = @transform_3, window_bounds = array<i64: 9, 256>}, {pipeline_mode = #tpu.pipeline_mode<synchronous>, transform_indices = @transform_4, window_bounds = array<i64: 4, 1>}, {pipeline_mode = #tpu.pipeline_mode<synchronous>, transform_indices = @transform_5, window_bounds = array<i64: 4, 1>}, {transform_indices = @transform_6, window_bounds = array<i64: 1, 4, 256>}]} {
    %c0 = arith.constant 0 : index
    %c0_0 = arith.constant 0 : index
    %c0_1 = arith.constant 0 : index
    %0 = vector.load %arg1[%c0, %c0_0, %c0_1] : memref<1x4x256xf32, #tpu.memory_space<vmem>>, vector<1x4x256xf32>
    %1 = vector.shape_cast %0 : vector<1x4x256xf32> to vector<4x256xf32>
    %c17_i32 = arith.constant 17 : i32
    %2 = tpu.dynamic_rotate %1 by %c17_i32 dim 1 : vector<4x256xf32>, i32 -> vector<4x256xf32>
    %c0_2 = arith.constant 0 : index
    %c0_3 = arith.constant 0 : index
    %3 = vector.load %arg4[%c0_2, %c0_3] : memref<9x256xf32, #tpu.memory_space<vmem>>, vector<1x256xf32>
    %4 = vector.broadcast %3 : vector<1x256xf32> to vector<4x256xf32>
    %5 = arith.mulf %2, %4 : vector<4x256xf32>
    %6 = arith.truncf %5 : vector<4x256xf32> to vector<4x256xbf16>
    %c0_4 = arith.constant 0 : index
    %c0_5 = arith.constant 0 : index
    %7 = vector.load %arg8[%c0_4, %c0_5] : memref<36x256xbf16, #tpu.memory_space<vmem>>, vector<4x256xbf16>
    tpu.vector_store %arg8[%c0_4, %c0_5], %6 {strides = array<i32>} : memref<36x256xbf16, #tpu.memory_space<vmem>>, vector<4x256xbf16>,
    %c16_i32 = arith.constant 16 : i32
    %8 = tpu.dynamic_rotate %1 by %c16_i32 dim 1 : vector<4x256xf32>, i32 -> vector<4x256xf32>
    %c1 = arith.constant 1 : index
    %c0_6 = arith.constant 0 : index
    %9 = vector.load %arg4[%c1, %c0_6] : memref<9x256xf32, #tpu.memory_space<vmem>>, vector<1x256xf32>
    %10 = vector.broadcast %9 : vector<1x256xf32> to vector<4x256xf32>
    %11 = arith.mulf %8, %10 : vector<4x256xf32>
    %12 = arith.truncf %11 : vector<4x256xf32> to vector<4x256xbf16>
    %c4 = arith.constant 4 : index
    %c0_7 = arith.constant 0 : index
    %13 = vector.load %arg8[%c4, %c0_7] : memref<36x256xbf16, #tpu.memory_space<vmem>>, vector<4x256xbf16>
    tpu.vector_store %arg8[%c4, %c0_7], %12 {strides = array<i32>} : memref<36x256xbf16, #tpu.memory_space<vmem>>, vector<4x256xbf16>,
    %c15_i32 = arith.constant 15 : i32
    %14 = tpu.dynamic_rotate %1 by %c15_i32 dim 1 : vector<4x256xf32>, i32 -> vector<4x256xf32>
    %c2 = arith.constant 2 : index
    %c0_8 = arith.constant 0 : index
    %15 = vector.load %arg4[%c2, %c0_8] : memref<9x256xf32, #tpu.memory_space<vmem>>, vector<1x256xf32>
    %16 = vector.broadcast %15 : vector<1x256xf32> to vector<4x256xf32>
    %17 = arith.mulf %14, %16 : vector<4x256xf32>
    %18 = arith.truncf %17 : vector<4x256xf32> to vector<4x256xbf16>
    %c8 = arith.constant 8 : index
    %c0_9 = arith.constant 0 : index
    %19 = vector.load %arg8[%c8, %c0_9] : memref<36x256xbf16, #tpu.memory_space<vmem>>, vector<4x256xbf16>
    tpu.vector_store %arg8[%c8, %c0_9], %18 {strides = array<i32>} : memref<36x256xbf16, #tpu.memory_space<vmem>>, vector<4x256xbf16>,
    %c1_i32 = arith.constant 1 : i32
    %20 = tpu.dynamic_rotate %1 by %c1_i32 dim 1 : vector<4x256xf32>, i32 -> vector<4x256xf32>
    %c3 = arith.constant 3 : index
    %c0_10 = arith.constant 0 : index
    %21 = vector.load %arg4[%c3, %c0_10] : memref<9x256xf32, #tpu.memory_space<vmem>>, vector<1x256xf32>
    %22 = vector.broadcast %21 : vector<1x256xf32> to vector<4x256xf32>
    %23 = arith.mulf %20, %22 : vector<4x256xf32>
    %24 = arith.truncf %23 : vector<4x256xf32> to vector<4x256xbf16>
    %c12 = arith.constant 12 : index
    %c0_11 = arith.constant 0 : index
    %25 = vector.load %arg8[%c12, %c0_11] : memref<36x256xbf16, #tpu.memory_space<vmem>>, vector<4x256xbf16>
    tpu.vector_store %arg8[%c12, %c0_11], %24 {strides = array<i32>} : memref<36x256xbf16, #tpu.memory_space<vmem>>, vector<4x256xbf16>,
    %26 = arith.truncf %1 : vector<4x256xf32> to vector<4x256xbf16>
    %c16 = arith.constant 16 : index
    %c0_12 = arith.constant 0 : index
    %27 = vector.load %arg8[%c16, %c0_12] : memref<36x256xbf16, #tpu.memory_space<vmem>>, vector<4x256xbf16>
    tpu.vector_store %arg8[%c16, %c0_12], %26 {strides = array<i32>} : memref<36x256xbf16, #tpu.memory_space<vmem>>, vector<4x256xbf16>,
    %c255_i32 = arith.constant 255 : i32
    %28 = tpu.dynamic_rotate %1 by %c255_i32 dim 1 : vector<4x256xf32>, i32 -> vector<4x256xf32>
    %c5 = arith.constant 5 : index
    %c0_13 = arith.constant 0 : index
    %29 = vector.load %arg4[%c5, %c0_13] : memref<9x256xf32, #tpu.memory_space<vmem>>, vector<1x256xf32>
    %30 = vector.broadcast %29 : vector<1x256xf32> to vector<4x256xf32>
    %31 = arith.mulf %28, %30 : vector<4x256xf32>
    %32 = arith.truncf %31 : vector<4x256xf32> to vector<4x256xbf16>
    %c20 = arith.constant 20 : index
    %c0_14 = arith.constant 0 : index
    %33 = vector.load %arg8[%c20, %c0_14] : memref<36x256xbf16, #tpu.memory_space<vmem>>, vector<4x256xbf16>
    tpu.vector_store %arg8[%c20, %c0_14], %32 {strides = array<i32>} : memref<36x256xbf16, #tpu.memory_space<vmem>>, vector<4x256xbf16>,
    %c241_i32 = arith.constant 241 : i32
    %34 = tpu.dynamic_rotate %1 by %c241_i32 dim 1 : vector<4x256xf32>, i32 -> vector<4x256xf32>
    %c6 = arith.constant 6 : index
    %c0_15 = arith.constant 0 : index
    %35 = vector.load %arg4[%c6, %c0_15] : memref<9x256xf32, #tpu.memory_space<vmem>>, vector<1x256xf32>
    %36 = vector.broadcast %35 : vector<1x256xf32> to vector<4x256xf32>
    %37 = arith.mulf %34, %36 : vector<4x256xf32>
    %38 = arith.truncf %37 : vector<4x256xf32> to vector<4x256xbf16>
    %c24 = arith.constant 24 : index
    %c0_16 = arith.constant 0 : index
    %39 = vector.load %arg8[%c24, %c0_16] : memref<36x256xbf16, #tpu.memory_space<vmem>>, vector<4x256xbf16>
    tpu.vector_store %arg8[%c24, %c0_16], %38 {strides = array<i32>} : memref<36x256xbf16, #tpu.memory_space<vmem>>, vector<4x256xbf16>,
    %c240_i32 = arith.constant 240 : i32
    %40 = tpu.dynamic_rotate %1 by %c240_i32 dim 1 : vector<4x256xf32>, i32 -> vector<4x256xf32>
    %c7 = arith.constant 7 : index
    %c0_17 = arith.constant 0 : index
    %41 = vector.load %arg4[%c7, %c0_17] : memref<9x256xf32, #tpu.memory_space<vmem>>, vector<1x256xf32>
    %42 = vector.broadcast %41 : vector<1x256xf32> to vector<4x256xf32>
    %43 = arith.mulf %40, %42 : vector<4x256xf32>
    %44 = arith.truncf %43 : vector<4x256xf32> to vector<4x256xbf16>
    %c28 = arith.constant 28 : index
    %c0_18 = arith.constant 0 : index
    %45 = vector.load %arg8[%c28, %c0_18] : memref<36x256xbf16, #tpu.memory_space<vmem>>, vector<4x256xbf16>
    tpu.vector_store %arg8[%c28, %c0_18], %44 {strides = array<i32>} : memref<36x256xbf16, #tpu.memory_space<vmem>>, vector<4x256xbf16>,
    %c239_i32 = arith.constant 239 : i32
    %46 = tpu.dynamic_rotate %1 by %c239_i32 dim 1 : vector<4x256xf32>, i32 -> vector<4x256xf32>
    %c8_19 = arith.constant 8 : index
    %c0_20 = arith.constant 0 : index
    %47 = vector.load %arg4[%c8_19, %c0_20] : memref<9x256xf32, #tpu.memory_space<vmem>>, vector<1x256xf32>
    %48 = vector.broadcast %47 : vector<1x256xf32> to vector<4x256xf32>
    %49 = arith.mulf %46, %48 : vector<4x256xf32>
    %50 = arith.truncf %49 : vector<4x256xf32> to vector<4x256xbf16>
    %c32 = arith.constant 32 : index
    %c0_21 = arith.constant 0 : index
    %51 = vector.load %arg8[%c32, %c0_21] : memref<36x256xbf16, #tpu.memory_space<vmem>>, vector<4x256xbf16>
    tpu.vector_store %arg8[%c32, %c0_21], %50 {strides = array<i32>} : memref<36x256xbf16, #tpu.memory_space<vmem>>, vector<4x256xbf16>,
    %c0_22 = arith.constant 0 : index
    %c0_23 = arith.constant 0 : index
    %52 = vector.load %arg2[%c0_22, %c0_23] : memref<4x36xbf16, #tpu.memory_space<vmem>>, vector<4x36xbf16>
    %c0_24 = arith.constant 0 : index
    %c0_25 = arith.constant 0 : index
    %53 = vector.load %arg8[%c0_24, %c0_25] : memref<36x256xbf16, #tpu.memory_space<vmem>>, vector<36x256xbf16>
    %cst = arith.constant dense<0.000000e+00> : vector<4x256xf32>
    %54 = tpu.matmul %52, %53, %cst {dimension_numbers = #tpu.dot_dimension_numbers<[1], [0], [0], [1], [0, 0, 1, 1], [], []>} : vector<4x36xbf16>, vector<36x256xbf16>, vector<4x256xf32> -> vector<4x256xf32>
    %c0_26 = arith.constant 0 : index
    %c0_27 = arith.constant 0 : index
    %55 = vector.load %arg5[%c0_26, %c0_27] : memref<4x1xf32, #tpu.memory_space<vmem>>, vector<4x1xf32>
    %56 = vector.broadcast %55 : vector<4x1xf32> to vector<4x256xf32>
    %57 = arith.addf %54, %56 : vector<4x256xf32>
    %cst_28 = arith.constant 0.000000e+00 : f32
    %58 = vector.broadcast %cst_28 : f32 to vector<4x256xf32>
    %59 = arith.maximumf %57, %58 : vector<4x256xf32>
    %c17_i32_29 = arith.constant 17 : i32
    %60 = tpu.dynamic_rotate %59 by %c17_i32_29 dim 1 : vector<4x256xf32>, i32 -> vector<4x256xf32>
    %c0_30 = arith.constant 0 : index
    %c0_31 = arith.constant 0 : index
    %61 = vector.load %arg4[%c0_30, %c0_31] : memref<9x256xf32, #tpu.memory_space<vmem>>, vector<1x256xf32>
    %62 = vector.broadcast %61 : vector<1x256xf32> to vector<4x256xf32>
    %63 = arith.mulf %60, %62 : vector<4x256xf32>
    %64 = arith.truncf %63 : vector<4x256xf32> to vector<4x256xbf16>
    %c0_32 = arith.constant 0 : index
    %c0_33 = arith.constant 0 : index
    %65 = vector.load %arg8[%c0_32, %c0_33] : memref<36x256xbf16, #tpu.memory_space<vmem>>, vector<4x256xbf16>
    tpu.vector_store %arg8[%c0_32, %c0_33], %64 {strides = array<i32>} : memref<36x256xbf16, #tpu.memory_space<vmem>>, vector<4x256xbf16>,
    %c16_i32_34 = arith.constant 16 : i32
    %66 = tpu.dynamic_rotate %59 by %c16_i32_34 dim 1 : vector<4x256xf32>, i32 -> vector<4x256xf32>
    %c1_35 = arith.constant 1 : index
    %c0_36 = arith.constant 0 : index
    %67 = vector.load %arg4[%c1_35, %c0_36] : memref<9x256xf32, #tpu.memory_space<vmem>>, vector<1x256xf32>
    %68 = vector.broadcast %67 : vector<1x256xf32> to vector<4x256xf32>
    %69 = arith.mulf %66, %68 : vector<4x256xf32>
    %70 = arith.truncf %69 : vector<4x256xf32> to vector<4x256xbf16>
    %c4_37 = arith.constant 4 : index
    %c0_38 = arith.constant 0 : index
    %71 = vector.load %arg8[%c4_37, %c0_38] : memref<36x256xbf16, #tpu.memory_space<vmem>>, vector<4x256xbf16>
    tpu.vector_store %arg8[%c4_37, %c0_38], %70 {strides = array<i32>} : memref<36x256xbf16, #tpu.memory_space<vmem>>, vector<4x256xbf16>,
    %c15_i32_39 = arith.constant 15 : i32
    %72 = tpu.dynamic_rotate %59 by %c15_i32_39 dim 1 : vector<4x256xf32>, i32 -> vector<4x256xf32>
    %c2_40 = arith.constant 2 : index
    %c0_41 = arith.constant 0 : index
    %73 = vector.load %arg4[%c2_40, %c0_41] : memref<9x256xf32, #tpu.memory_space<vmem>>, vector<1x256xf32>
    %74 = vector.broadcast %73 : vector<1x256xf32> to vector<4x256xf32>
    %75 = arith.mulf %72, %74 : vector<4x256xf32>
    %76 = arith.truncf %75 : vector<4x256xf32> to vector<4x256xbf16>
    %c8_42 = arith.constant 8 : index
    %c0_43 = arith.constant 0 : index
    %77 = vector.load %arg8[%c8_42, %c0_43] : memref<36x256xbf16, #tpu.memory_space<vmem>>, vector<4x256xbf16>
    tpu.vector_store %arg8[%c8_42, %c0_43], %76 {strides = array<i32>} : memref<36x256xbf16, #tpu.memory_space<vmem>>, vector<4x256xbf16>,
    %c1_i32_44 = arith.constant 1 : i32
    %78 = tpu.dynamic_rotate %59 by %c1_i32_44 dim 1 : vector<4x256xf32>, i32 -> vector<4x256xf32>
    %c3_45 = arith.constant 3 : index
    %c0_46 = arith.constant 0 : index
    %79 = vector.load %arg4[%c3_45, %c0_46] : memref<9x256xf32, #tpu.memory_space<vmem>>, vector<1x256xf32>
    %80 = vector.broadcast %79 : vector<1x256xf32> to vector<4x256xf32>
    %81 = arith.mulf %78, %80 : vector<4x256xf32>
    %82 = arith.truncf %81 : vector<4x256xf32> to vector<4x256xbf16>
    %c12_47 = arith.constant 12 : index
    %c0_48 = arith.constant 0 : index
    %83 = vector.load %arg8[%c12_47, %c0_48] : memref<36x256xbf16, #tpu.memory_space<vmem>>, vector<4x256xbf16>
    tpu.vector_store %arg8[%c12_47, %c0_48], %82 {strides = array<i32>} : memref<36x256xbf16, #tpu.memory_space<vmem>>, vector<4x256xbf16>,
    %84 = arith.truncf %59 : vector<4x256xf32> to vector<4x256xbf16>
    %c16_49 = arith.constant 16 : index
    %c0_50 = arith.constant 0 : index
    %85 = vector.load %arg8[%c16_49, %c0_50] : memref<36x256xbf16, #tpu.memory_space<vmem>>, vector<4x256xbf16>
    tpu.vector_store %arg8[%c16_49, %c0_50], %84 {strides = array<i32>} : memref<36x256xbf16, #tpu.memory_space<vmem>>, vector<4x256xbf16>,
    %c255_i32_51 = arith.constant 255 : i32
    %86 = tpu.dynamic_rotate %59 by %c255_i32_51 dim 1 : vector<4x256xf32>, i32 -> vector<4x256xf32>
    %c5_52 = arith.constant 5 : index
    %c0_53 = arith.constant 0 : index
    %87 = vector.load %arg4[%c5_52, %c0_53] : memref<9x256xf32, #tpu.memory_space<vmem>>, vector<1x256xf32>
    %88 = vector.broadcast %87 : vector<1x256xf32> to vector<4x256xf32>
    %89 = arith.mulf %86, %88 : vector<4x256xf32>
    %90 = arith.truncf %89 : vector<4x256xf32> to vector<4x256xbf16>
    %c20_54 = arith.constant 20 : index
    %c0_55 = arith.constant 0 : index
    %91 = vector.load %arg8[%c20_54, %c0_55] : memref<36x256xbf16, #tpu.memory_space<vmem>>, vector<4x256xbf16>
    tpu.vector_store %arg8[%c20_54, %c0_55], %90 {strides = array<i32>} : memref<36x256xbf16, #tpu.memory_space<vmem>>, vector<4x256xbf16>,
    %c241_i32_56 = arith.constant 241 : i32
    %92 = tpu.dynamic_rotate %59 by %c241_i32_56 dim 1 : vector<4x256xf32>, i32 -> vector<4x256xf32>
    %c6_57 = arith.constant 6 : index
    %c0_58 = arith.constant 0 : index
    %93 = vector.load %arg4[%c6_57, %c0_58] : memref<9x256xf32, #tpu.memory_space<vmem>>, vector<1x256xf32>
    %94 = vector.broadcast %93 : vector<1x256xf32> to vector<4x256xf32>
    %95 = arith.mulf %92, %94 : vector<4x256xf32>
    %96 = arith.truncf %95 : vector<4x256xf32> to vector<4x256xbf16>
    %c24_59 = arith.constant 24 : index
    %c0_60 = arith.constant 0 : index
    %97 = vector.load %arg8[%c24_59, %c0_60] : memref<36x256xbf16, #tpu.memory_space<vmem>>, vector<4x256xbf16>
    tpu.vector_store %arg8[%c24_59, %c0_60], %96 {strides = array<i32>} : memref<36x256xbf16, #tpu.memory_space<vmem>>, vector<4x256xbf16>,
    %c240_i32_61 = arith.constant 240 : i32
    %98 = tpu.dynamic_rotate %59 by %c240_i32_61 dim 1 : vector<4x256xf32>, i32 -> vector<4x256xf32>
    %c7_62 = arith.constant 7 : index
    %c0_63 = arith.constant 0 : index
    %99 = vector.load %arg4[%c7_62, %c0_63] : memref<9x256xf32, #tpu.memory_space<vmem>>, vector<1x256xf32>
    %100 = vector.broadcast %99 : vector<1x256xf32> to vector<4x256xf32>
    %101 = arith.mulf %98, %100 : vector<4x256xf32>
    %102 = arith.truncf %101 : vector<4x256xf32> to vector<4x256xbf16>
    %c28_64 = arith.constant 28 : index
    %c0_65 = arith.constant 0 : index
    %103 = vector.load %arg8[%c28_64, %c0_65] : memref<36x256xbf16, #tpu.memory_space<vmem>>, vector<4x256xbf16>
    tpu.vector_store %arg8[%c28_64, %c0_65], %102 {strides = array<i32>} : memref<36x256xbf16, #tpu.memory_space<vmem>>, vector<4x256xbf16>,
    %c239_i32_66 = arith.constant 239 : i32
    %104 = tpu.dynamic_rotate %59 by %c239_i32_66 dim 1 : vector<4x256xf32>, i32 -> vector<4x256xf32>
    %c8_67 = arith.constant 8 : index
    %c0_68 = arith.constant 0 : index
    %105 = vector.load %arg4[%c8_67, %c0_68] : memref<9x256xf32, #tpu.memory_space<vmem>>, vector<1x256xf32>
    %106 = vector.broadcast %105 : vector<1x256xf32> to vector<4x256xf32>
    %107 = arith.mulf %104, %106 : vector<4x256xf32>
    %108 = arith.truncf %107 : vector<4x256xf32> to vector<4x256xbf16>
    %c32_69 = arith.constant 32 : index
    %c0_70 = arith.constant 0 : index
    %109 = vector.load %arg8[%c32_69, %c0_70] : memref<36x256xbf16, #tpu.memory_space<vmem>>, vector<4x256xbf16>
    tpu.vector_store %arg8[%c32_69, %c0_70], %108 {strides = array<i32>} : memref<36x256xbf16, #tpu.memory_space<vmem>>, vector<4x256xbf16>,
    %c0_71 = arith.constant 0 : index
    %c0_72 = arith.constant 0 : index
    %110 = vector.load %arg3[%c0_71, %c0_72] : memref<4x36xbf16, #tpu.memory_space<vmem>>, vector<4x36xbf16>
    %c0_73 = arith.constant 0 : index
    %c0_74 = arith.constant 0 : index
    %111 = vector.load %arg8[%c0_73, %c0_74] : memref<36x256xbf16, #tpu.memory_space<vmem>>, vector<36x256xbf16>
    %cst_75 = arith.constant dense<0.000000e+00> : vector<4x256xf32>
    %112 = tpu.matmul %110, %111, %cst_75 {dimension_numbers = #tpu.dot_dimension_numbers<[1], [0], [0], [1], [0, 0, 1, 1], [], []>} : vector<4x36xbf16>, vector<36x256xbf16>, vector<4x256xf32> -> vector<4x256xf32>
    %c0_76 = arith.constant 0 : index
    %c0_77 = arith.constant 0 : index
    %113 = vector.load %arg6[%c0_76, %c0_77] : memref<4x1xf32, #tpu.memory_space<vmem>>, vector<4x1xf32>
    %114 = vector.broadcast %113 : vector<4x1xf32> to vector<4x256xf32>
    %115 = arith.addf %112, %114 : vector<4x256xf32>
    %116 = arith.addf %115, %1 : vector<4x256xf32>
    %cst_78 = arith.constant 0.000000e+00 : f32
    %117 = vector.broadcast %cst_78 : f32 to vector<4x256xf32>
    %118 = arith.maximumf %116, %117 : vector<4x256xf32>
    %c0_79 = arith.constant 0 : index
    %c0_80 = arith.constant 0 : index
    %c0_81 = arith.constant 0 : index
    %119 = vector.load %arg7[%c0_79, %c0_80, %c0_81] : memref<1x4x256xf32, #tpu.memory_space<vmem>>, vector<1x4x256xf32>
    %120 = vector.shape_cast %119 : vector<1x4x256xf32> to vector<4x256xf32>
    %121 = vector.shape_cast %118 : vector<4x256xf32> to vector<1x4x256xf32>
    tpu.vector_store %arg7[%c0_79, %c0_80, %c0_81], %121 {strides = array<i32>} : memref<1x4x256xf32, #tpu.memory_space<vmem>>, vector<1x4x256xf32>,
    return
  }
  func.func @transform_0(%arg0: i32) -> (i32, i32, i32) {
    %c0_i32 = arith.constant 0 : i32
    %c0_i32_0 = arith.constant 0 : i32
    %c0_i32_1 = arith.constant 0 : i32
    return %arg0, %c0_i32, %c0_i32_0 : i32, i32, i32
  }
  func.func @transform_1(%arg0: i32) -> (i32, i32) {
    %c0_i32 = arith.constant 0 : i32
    %c0_i32_0 = arith.constant 0 : i32
    %c0_i32_1 = arith.constant 0 : i32
    return %c0_i32, %c0_i32_0 : i32, i32
  }
  func.func @transform_2(%arg0: i32) -> (i32, i32) {
    %c0_i32 = arith.constant 0 : i32
    %c0_i32_0 = arith.constant 0 : i32
    %c0_i32_1 = arith.constant 0 : i32
    return %c0_i32, %c0_i32_0 : i32, i32
  }
  func.func @transform_3(%arg0: i32) -> (i32, i32) {
    %c0_i32 = arith.constant 0 : i32
    %c0_i32_0 = arith.constant 0 : i32
    %c0_i32_1 = arith.constant 0 : i32
    return %c0_i32, %c0_i32_0 : i32, i32
  }
  func.func @transform_4(%arg0: i32) -> (i32, i32) {
    %c0_i32 = arith.constant 0 : i32
    %c0_i32_0 = arith.constant 0 : i32
    %c0_i32_1 = arith.constant 0 : i32
    return %c0_i32, %c0_i32_0 : i32, i32
  }
  func.func @transform_5(%arg0: i32) -> (i32, i32) {
    %c0_i32 = arith.constant 0 : i32
    %c0_i32_0 = arith.constant 0 : i32
    %c0_i32_1 = arith.constant 0 : i32
    return %c0_i32, %c0_i32_0 : i32, i32
  }
  func.func @transform_6(%arg0: i32) -> (i32, i32, i32) {
    %c0_i32 = arith.constant 0 : i32
    %c0_i32_0 = arith.constant 0 : i32
    %c0_i32_1 = arith.constant 0 : i32
    return %arg0, %c0_i32, %c0_i32_0 : i32, i32, i32
  }
}

</mosaic_0001>

<bundles_post_ra>
// kernel: basic_block.1
= control target key start
LH: loop header
LB: loop body
LE: loop exit
PB: predicated region body
PF: predicated region fallthrough
CT: control target
= control target key end

     0   :  { %s1172_s21 = smov 0   ;;  %s1430_s0 = inlined_call_operand.vmem [shape: f32[2,4,256], index: 0, kind: input, shape index: {}]   ;;  %s1431_s1 = inlined_call_operand.vmem [shape: bf16[4,36], index: 1, kind: input, shape index: {}]   ;;  %s1432_s2 = inlined_call_operand.vmem [shape: bf16[4,36], index: 2, kind: input, shape index: {}]   ;;  %s1433_s3 = inlined_call_operand.vmem [shape: f32[9,256], index: 3, kind: input, shape index: {}]   ;;  %s1434_s4 = inlined_call_operand.vmem [shape: f32[4,1], index: 4, kind: input, shape index: {}]   ;;  %s1435_s5 = inlined_call_operand.vmem [shape: f32[4,1], index: 5, kind: input, shape index: {}]   ;;  %s1436_s6 = inlined_call_operand.vmem [shape: f32[2,4,256], index: 6, kind: output, shape index: {}]  }
   0x1 LB: > { %s1006_s22 = sadd.s32 4294967295, %s1126_s21   ;;  %p1010_p0 = scmp.ge.s32.totalorder %s1126_s21, 1  ;;  %s1126_s21 = sphi %s1172_s21, %s16_s21  }
   0x2   : > { %p212_p1 = scmp.lt.s32.totalorder %s1126_s21, 3 }
   0x4   : > { %p213_p2 = pnand %p1010_p0, %p212_p1 }
   0x5   : > { %p242_p3 = scmp.lt.s32.totalorder (!%p213_p2), %s1006_s22, 1  ;;  %s1128_s27 = smov (!%p213_p2), 127  }
   0x6   : > { %216 = sbr.rel (%p213_p2) target bundleno = 740 (0x2e4), region = 44  ;;  %s1129_s28 = smov (!%p213_p2), 111  }
   0x7   : > { %s1130_s29 = smov (!%p213_p2), 112   ;;  %s1131_s30 = smov (!%p213_p2), 113  }
   0x8   : > { %s1132_s7 = smov (!%p213_p2), 16   ;;  %s1133_s8 = smov (!%p213_p2), 1  }
   0x9   : > { %s1134_s9 = smov (!%p213_p2), 17   ;;  %s1135_s10 = smov (!%p213_p2), 15  }
   0xb   : > { %s1438_s22 = smov (!%p242_p3, %s1006_s22), 1  ;;  %v1136_v3 = vmov 0   ;;  %v525_v4 = vld [vmem:[%s1434_s4] sm:$0xf]  ;;  %v261_v5 = vlaneseq  ;;  %vm560_vm6 = vcmask 1041408   ;;  %vm556_vm9 = vcmask 293888  }
   0xc   : > { %s1065_s23 = sshll.u32 %s1438_s22, 3  ;;  %599 = vmatprep.mubr.bf16.mxu0 %v1136_v3  ;;  %1102 = vset.pattern.permute.xlu0 %v1136_v3  ;;  %v1023_v10 = vld [vmem:[%s1433_s3 + $0x5] ss:$8 sm:$0x3] }
   0xd   : > { %s246_s26 = scalar_lea.vmem %s1430_s0, %s1065_s23  ;;  %933 = vmatprep.mubr.bf16.mxu1 %v1136_v3  ;;  %v269_v6 = vshrl.u32 %v261_v5, 7  ;;  %v1231_v7 = vand.u32 127, %v261_v5  ;;  %v1027_v15 = vld [vmem:[%s1433_s3 + $0x7] ss:$8 sm:$0x3]  ;;  %s251_s18 = scalar_lea.vmem %s1436_s6, %s1065_s23 }
   0xe   : > { %v1188_v0 = vld [vmem:[%s246_s26] sm:$0xff]  ;;  %v1029_v16 = vld [vmem:[%s1433_s3 + $0x10] ss:$8 sm:$0x3] }
   0xf   : > { %393 = vrot.lane.b32.xlu1 %v1188_v0, %s1128_s27  ;;  %488 = vrot.lane.b32.xlu0 %v1188_v0, %s1129_s28  ;;  %v1196_v1 = vcombine.high %v1188_v0, %v1188_v0  ;;  %v1233_v8 = vsub.s32 0, %v269_v6  ;;  %v1235_v9 = vsub.s32 1, %v269_v6  ;;  %vm397_vm0 = vcmp.lt.s32.totalorder %v1231_v7, 127  ;;  %v1025_v22 = vld [vmem:[%s1433_s3 + $0x6] ss:$8 sm:$0x3] }
  0x10   : > { %vm460_vm1 = vcmp.lt.s32.totalorder %v1231_v7, 112  ;;  %vm492_vm2 = vcmp.lt.s32.totalorder %v1231_v7, 111  ;;  %vm429_vm3 = vcmp.lt.s32.totalorder %v1231_v7, 113  ;;  %v1016_v41 = vld [vmem:[%s1433_s3 + $0x1] ss:$8 sm:$0x3] }
  0x11   : > { %v1071_v2 = vpack.c.bf16 %v1196_v1, %v1188_v0  ;;  %v406_v13 = vrot.slane %v1023_v10, %v1233_v8  ;;  %v410_v14 = vrot.slane %v1023_v10, %v1235_v9  ;;  %v469_v21 = vrot.slane %v1027_v15, %v1233_v8  ;;  %v1020_v54 = vld [vmem:[%s1433_s3 + $0x3] ss:$8 sm:$0x3] }
  0x12   : > { %v473_v25 = vrot.slane %v1027_v15, %v1235_v9  ;;  %v501_v26 = vrot.slane %v1029_v16, %v1233_v8  ;;  %v505_v27 = vrot.slane %v1029_v16, %v1235_v9  ;;  %v438_v31 = vrot.slane %v1025_v22, %v1233_v8 }
  0x13   : > { %456 = vrot.lane.b32.xlu0 %v1188_v0, %s1130_s29  ;;  %395 = vrot.lane.b32.xlu1 %v1196_v1, %s1128_s27  ;;  %392 = vst [vmem:[#allocation2 + $0x20] sm:$0x33] %v1071_v2  ;;  %v442_v32 = vrot.slane %v1025_v22, %v1235_v9  ;;  %vm293_vm4 = vcmp.lt.s32.totalorder %v1231_v7, 16  ;;  %v302_v49 = vrot.slane %v1016_v41, %v1233_v8  ;;  %vm356_vm5 = vcmp.lt.s32.totalorder %v1231_v7, 1 }
  0x14   : > { %v306_v53 = vrot.slane %v1016_v41, %v1235_v9  ;;  %v365_v62 = vrot.slane %v1020_v54, %v1233_v8  ;;  %v369_v63 = vrot.slane %v1020_v54, %v1235_v9  ;;  %v266_v2 = vld [vmem:[%s1433_s3] ss:$8 sm:$0x3]  ;;  %vm263_vm7 = vcmp.lt.s32.totalorder %v1231_v7, 17 }
  0x15   : > { %v275_v16 = vrot.slane %v266_v2, %v1235_v9  ;;  %vm325_vm8 = vcmp.lt.s32.totalorder %v1231_v7, 15  ;;  %v861_v54 = vld [vmem:[%s1435_s5] sm:$0xf] }
  0x17   : > { %458 = vrot.lane.b32.xlu1 %v1196_v1, %s1130_s29  ;;  %490 = vrot.lane.b32.xlu0 %v1196_v1, %s1129_s28 }
  0x1b   : > { %427 = vrot.lane.b32.xlu1 %v1196_v1, %s1131_s30  ;;  %425 = vrot.lane.b32.xlu0 %v1188_v0, %s1131_s30 }
  0x1f   : > { %291 = vrot.lane.b32.xlu1 %v1196_v1, %s1132_s7  ;;  %289 = vrot.lane.b32.xlu0 %v1188_v0, %s1132_s7 }
  0x23   : > { %354 = vrot.lane.b32.xlu1 %v1196_v1, %s1133_s8  ;;  %352 = vrot.lane.b32.xlu0 %v1188_v0, %s1133_s8 }
  0x27   : > { %259 = vrot.lane.b32.xlu1 %v1196_v1, %s1134_s9  ;;  %257 = vrot.lane.b32.xlu0 %v1188_v0, %s1134_s9 }
  0x2b   : > { %323 = vrot.lane.b32.xlu1 %v1196_v1, %s1135_s10  ;;  %321 = vrot.lane.b32.xlu0 %v1188_v0, %s1135_s10 }
  0x2f   : > { %528 = vperm.xlu0 %1102, %v525_v4  }
  0x81   : > { %v394_v11 = vpop.permute.xlu1 %393  ;;  %v489_v12 = vpop.permute.xlu0 %488 }
  0x85   : > { %v457_v17 = vpop.permute.xlu0 %456  ;;  %v396_v18 = vpop.permute.xlu1 %395 }
  0x86   : > { %v398_v19 = vsel %vm397_vm0, %v394_v11, %v396_v18  ;;  %v399_v20 = vsel %vm397_vm0, %v396_v18, %v394_v11  ;;  %v271_v11 = vrot.slane %v266_v2, %v1233_v8 }
  0x87   : > { %v413_v23 = vmul.f32 %v406_v13, %v398_v19  ;;  %v414_v24 = vmul.f32 %v410_v14, %v399_v20 }
  0x89   : > { %v1072_v28 = vpack.c.bf16 %v414_v24, %v413_v23  ;;  %v459_v29 = vpop.permute.xlu1 %458  ;;  %v491_v30 = vpop.permute.xlu0 %490 }
  0x8a   : > { %v461_v33 = vsel %vm460_vm1, %v457_v17, %v459_v29  ;;  %v462_v34 = vsel %vm460_vm1, %v459_v29, %v457_v17  ;;  %v493_v35 = vsel %vm492_vm2, %v489_v12, %v491_v30  ;;  %v494_v36 = vsel %vm492_vm2, %v491_v30, %v489_v12  ;;  %v1018_v17 = vld [vmem:[%s1433_s3 + $0x2] ss:$8 sm:$0x3] }
  0x8b   : > { %v422_v37 = vrot.slane %v1072_v28, 6  ;;  %v476_v38 = vmul.f32 %v469_v21, %v461_v33  ;;  %v477_v39 = vmul.f32 %v473_v25, %v462_v34  ;;  %v508_v40 = vmul.f32 %v501_v26, %v493_v35 }
  0x8c   : > { %v509_v42 = vmul.f32 %v505_v27, %v494_v36  ;;  %v334_v26 = vrot.slane %v1018_v17, %v1233_v8 }
  0x8d   : > { %424 = vst [vmem:[#allocation2 + $0x20] sm:$0xcc] %v422_v37  ;;  %v1074_v43 = vpack.c.bf16 %v477_v39, %v476_v38  ;;  %v428_v44 = vpop.permute.xlu1 %427  ;;  %v426_v45 = vpop.permute.xlu0 %425 }
  0x8e   : > { %v1075_v46 = vpack.c.bf16 %v509_v42, %v508_v40  ;;  %v430_v47 = vsel %vm429_vm3, %v426_v45, %v428_v44  ;;  %v431_v48 = vsel %vm429_vm3, %v428_v44, %v426_v45 }
  0x8f   : > { %v485_v50 = vrot.slane %v1074_v43, 6  ;;  %v445_v51 = vmul.f32 %v438_v31, %v430_v47  ;;  %v446_v52 = vmul.f32 %v442_v32, %v431_v48  ;;  %v338_v31 = vrot.slane %v1018_v17, %v1235_v9  ;;  %v519_v43 = vld [vmem:[%s1431_s1] sm:$0x3] }
  0x90   : > { %518 = vst [vmem:[#allocation2 + $0x18] sm:$0x33] %v1075_v46 }
  0x91   : > { %487 = vst [vmem:[#allocation2 + $0x10] sm:$0xcc] %v485_v50  ;;  %v1073_v55 = vpack.c.bf16 %v446_v52, %v445_v51  ;;  %v292_v56 = vpop.permute.xlu1 %291  ;;  %v290_v57 = vpop.permute.xlu0 %289 }
  0x92   : > { %v294_v58 = vsel %vm293_vm4, %v290_v57, %v292_v56  ;;  %v295_v59 = vsel %vm293_vm4, %v292_v56, %v290_v57 }
  0x93   : > { %455 = vst [vmem:[#allocation2 + $0x10] sm:$0x33] %v1073_v55  ;;  %v309_v60 = vmul.f32 %v302_v49, %v295_v59  ;;  %v310_v61 = vmul.f32 %v306_v53, %v294_v58  ;;  %v1053_v55 = vld [vmem:[%s1433_s3 + $0x10] ss:$8 sm:$0x3] }
  0x94   : > { %v837_v58 = vrot.slane %v1053_v55, %v1233_v8  ;;  %v841_v59 = vrot.slane %v1053_v55, %v1235_v9  ;;  %v616_v55 = vld [vmem:[%s1433_s3] ss:$8 sm:$0x3] }
  0x95   : > { %v1068_v3 = vpack.c.bf16 %v310_v61, %v309_v60  ;;  %v355_v4 = vpop.permute.xlu1 %354  ;;  %v353_v5 = vpop.permute.xlu0 %352  ;;  %v1047_v60 = vld [vmem:[%s1433_s3 + $0x5] ss:$8 sm:$0x3] }
  0x96   : > { %v357_v6 = vsel %vm356_vm5, %v353_v5, %v355_v4  ;;  %v358_v10 = vsel %vm356_vm5, %v355_v4, %v353_v5  ;;  %v748_v5 = vrot.slane %v1047_v60, %v1233_v8 }
  0x97   : > { %v318_v12 = vrot.slane %v1068_v3, 6  ;;  %v372_v13 = vmul.f32 %v365_v62, %v358_v10  ;;  %v373_v14 = vmul.f32 %v369_v63, %v357_v6  ;;  %v524_v15 = vld [vmem:[#allocation2 + $0x18] sm:$0x33]  ;;  %v752_v6 = vrot.slane %v1047_v60, %v1235_v9  ;;  %v1051_v10 = vld [vmem:[%s1433_s3 + $0x7] ss:$8 sm:$0x3] }
  0x98   : > { %v1036_v18 = vcombine.high %v524_v15, %v524_v15  ;;  %v1035_v19 = vcombine.low %v524_v15, %v524_v15  ;;  %v621_v60 = vrot.slane %v616_v55, %v1233_v8 }
  0x99   : > { %320 = vst [vmem:[#allocation2 + $0x8] sm:$0xcc] %v318_v12  ;;  %v1070_v20 = vpack.c.bf16 %v373_v14, %v372_v13  ;;  %v260_v21 = vpop.permute.xlu1 %259  ;;  %v258_v22 = vpop.permute.xlu0 %257 }
  0x9a   : > { %1037 = vmatprep.subr.msk.bf16.mxu0 %vm560_vm6, %v1036_v18  ;;  %v264_v23 = vsel %vm263_vm7, %v258_v22, %v260_v21  ;;  %v265_v24 = vsel %vm263_vm7, %v260_v21, %v258_v22  ;;  %v562_v25 = vsel %vm560_vm6, %v1035_v19, 0  ;;  %v1106_v27 = vld [vmem:[#allocation2 + $0x24] ss:$-16 sps:$4 sm:$0xff]   ;;  %v1108_v35 = vld [vmem:[#allocation2 + $0x20] ss:$-16 sps:$4 sm:$0xff]   ;;  %v807_v18 = vrot.slane %v1051_v10, %v1233_v8 }
  0x9b   : > { %v381_v28 = vrot.slane %v1070_v20, 6  ;;  %v278_v29 = vmul.f32 %v271_v11, %v265_v24  ;;  %v279_v30 = vmul.f32 %v275_v16, %v264_v23  ;;  %578 = vmatpush1.bf16.msra.mxu0 %v562_v25  ;;  %v811_v19 = vrot.slane %v1051_v10, %v1235_v9  ;;  %v1049_v20 = vld [vmem:[%s1433_s3 + $0x6] ss:$8 sm:$0x3] }
  0x9c   : > { %579 = vmatprep.subr.bf16.mxu0 %v1106_v27  ;;  %v778_v25 = vrot.slane %v1049_v20, %v1233_v8 }
  0x9d   : > { %383 = vst [vmem:[#allocation2] sm:$0xcc] %v381_v28  ;;  %v1067_v32 = vpack.c.bf16 %v279_v30, %v278_v29  ;;  %v324_v33 = vpop.permute.xlu1 %323  ;;  %v322_v34 = vpop.permute.xlu0 %321  ;;  %v782_v30 = vrot.slane %v1049_v20, %v1235_v9 }
  0x9e   : > { %v326_v36 = vsel %vm325_vm8, %v322_v34, %v324_v33  ;;  %v327_v37 = vsel %vm325_vm8, %v324_v33, %v322_v34 }
  0x9f   : > { %288 = vst [vmem:[#allocation2 + $0x8] sm:$0x33] %v1067_v32  ;;  %v341_v38 = vmul.f32 %v334_v26, %v327_v37  ;;  %v342_v39 = vmul.f32 %v338_v31, %v326_v36  ;;  %580 = vmatpush1.bf16.msra.mxu0 %v1108_v35  ;;  %v1040_v31 = vld [vmem:[%s1433_s3 + $0x1] ss:$8 sm:$0x3] }
  0xa0   : > { %v650_v37 = vrot.slane %v1040_v31, %v1233_v8 }
  0xa1   : > { %v1069_v40 = vpack.c.bf16 %v342_v39, %v341_v38  ;;  %v654_v38 = vrot.slane %v1040_v31, %v1235_v9 }
  0xa3   : > { %351 = vst [vmem:[#allocation2] sm:$0x33] %v1069_v40 }
  0xaa   : > { %v1109_v41 = vld [vmem:[#allocation2 + $0xc] ss:$-8 sps:$4 sm:$0xff]   ;;  %v1111_v42 = vld [vmem:[#allocation2 + $0x8] ss:$-8 sps:$4 sm:$0xff]   ;;  %v529_v44 = vpop.permute.xlu0 %528 }
  0xab   : > { %581 = vmatprep.subr.bf16.mxu0 %v1109_v41 }
  0xac   : > { %582 = vmatpush1.bf16.msra.mxu0 %v1111_v42 }
  0xaf   : > { %1038 = vmatmul.mubr.msk.bf16.vlgmr.msra.gmra.mxu0 %vm556_vm9, %v519_v43 }
 0x16f   : > { %v601_v45 = vpop.f32.mrf.mxu0 }
 0x170   : > { %v602_v46 = vadd.f32 %v601_v45, %v529_v44 }
 0x171   : > { %v603_v47 = vpop.f32.mrf.mxu0 }
 0x172   : > { %v608_v48 = vmax.f32 %v602_v46, 0.0  ;;  %v604_v49 = vadd.f32 %v603_v47, %v529_v44  ;;  %v1044_v44 = vld [vmem:[%s1433_s3 + $0x3] ss:$8 sm:$0x3] }
 0x173   : > { %v605_v50 = vpop.f32.mrf.mxu0 }
 0x174   : > { %v609_v51 = vmax.f32 %v604_v49, 0.0  ;;  %737 = vrot.lane.b32.xlu0 %v608_v48, %s1128_s27  ;;  %826 = vrot.lane.b32.xlu1 %v608_v48, %s1129_s28 }
 0x175   : > { %v606_v52 = vpop.f32.mrf.mxu0 }
 0x176   : > { %v1080_v53 = vpack.c.bf16 %v609_v51, %v608_v48 }
 0x178   : > { %796 = vrot.lane.b32.xlu0 %v608_v48, %s1130_s29  ;;  %828 = vrot.lane.b32.xlu1 %v609_v51, %s1129_s28  ;;  %736 = vst [vmem:[#allocation2 + $0x20] sm:$0x33] %v1080_v53  ;;  %v709_v53 = vrot.slane %v1044_v44, %v1233_v8 }
 0x17c   : > { %767 = vrot.lane.b32.xlu0 %v608_v48, %s1131_s30  ;;  %739 = vrot.lane.b32.xlu1 %v609_v51, %s1128_s27 }
 0x180   : > { %639 = vrot.lane.b32.xlu0 %v608_v48, %s1132_s7  ;;  %798 = vrot.lane.b32.xlu1 %v609_v51, %s1130_s29 }
 0x184   : > { %698 = vrot.lane.b32.xlu0 %v608_v48, %s1133_s8  ;;  %769 = vrot.lane.b32.xlu1 %v609_v51, %s1131_s30 }
 0x188   : > { %610 = vrot.lane.b32.xlu0 %v608_v48, %s1134_s9  ;;  %641 = vrot.lane.b32.xlu1 %v609_v51, %s1132_s7 }
 0x18c   : > { %669 = vrot.lane.b32.xlu0 %v608_v48, %s1135_s10  ;;  %700 = vrot.lane.b32.xlu1 %v609_v51, %s1133_s8 }
 0x190   : > { %864 = vperm.xlu0 %1102, %v861_v54   ;;  %612 = vrot.lane.b32.xlu1 %v609_v51, %s1134_s9  ;;  %v713_v54 = vrot.slane %v1044_v44, %v1235_v9 }
 0x194   : > { %671 = vrot.lane.b32.xlu1 %v609_v51, %s1135_s10 }
 0x1e6   : > { %v738_v56 = vpop.permute.xlu0 %737  ;;  %v827_v57 = vpop.permute.xlu1 %826 }
 0x1ea   : > { %v797_v61 = vpop.permute.xlu0 %796  ;;  %v829_v62 = vpop.permute.xlu1 %828 }
 0x1eb   : > { %v830_v63 = vsel %vm492_vm2, %v827_v57, %v829_v62  ;;  %v831_v2 = vsel %vm492_vm2, %v829_v62, %v827_v57 }
 0x1ec   : > { %v844_v3 = vmul.f32 %v837_v58, %v830_v63  ;;  %v845_v4 = vmul.f32 %v841_v59, %v831_v2 }
 0x1ee   : > { %v1084_v11 = vpack.c.bf16 %v845_v4, %v844_v3  ;;  %v768_v12 = vpop.permute.xlu0 %767  ;;  %v740_v13 = vpop.permute.xlu1 %739  ;;  %v625_v3 = vrot.slane %v616_v55, %v1235_v9  ;;  %v1042_v4 = vld [vmem:[%s1433_s3 + $0x2] ss:$8 sm:$0x3] }
 0x1ef   : > { %v741_v14 = vsel %vm397_vm0, %v738_v56, %v740_v13  ;;  %v742_v15 = vsel %vm397_vm0, %v740_v13, %v738_v56 }
 0x1f0   : > { %854 = vst [vmem:[#allocation2 + $0x18] sm:$0x33] %v1084_v11  ;;  %v755_v16 = vmul.f32 %v748_v5, %v741_v14  ;;  %v756_v17 = vmul.f32 %v752_v6, %v742_v15 }
 0x1f2   : > { %v1081_v21 = vpack.c.bf16 %v756_v17, %v755_v16  ;;  %v799_v22 = vpop.permute.xlu1 %798  ;;  %v640_v27 = vpop.permute.xlu0 %639 }
 0x1f3   : > { %v800_v23 = vsel %vm460_vm1, %v797_v61, %v799_v22  ;;  %v801_v24 = vsel %vm460_vm1, %v799_v22, %v797_v61 }
 0x1f4   : > { %v764_v26 = vrot.slane %v1081_v21, 6  ;;  %v814_v28 = vmul.f32 %v807_v18, %v800_v23  ;;  %v815_v29 = vmul.f32 %v811_v19, %v801_v24  ;;  %v684_v18 = vrot.slane %v1042_v4, %v1235_v9  ;;  %v855_v9 = vld [vmem:[%s1432_s2] sm:$0x3] }
 0x1f6   : > { %766 = vst [vmem:[#allocation2 + $0x20] sm:$0xcc] %v764_v26  ;;  %v1083_v32 = vpack.c.bf16 %v815_v29, %v814_v28  ;;  %v770_v33 = vpop.permute.xlu1 %769  ;;  %v699_v45 = vpop.permute.xlu0 %698 }
 0x1f7   : > { %v771_v34 = vsel %vm429_vm3, %v768_v12, %v770_v33  ;;  %v772_v35 = vsel %vm429_vm3, %v770_v33, %v768_v12  ;;  %v860_v36 = vld [vmem:[#allocation2 + $0x18] sm:$0x33]  ;;  %v680_v12 = vrot.slane %v1042_v4, %v1233_v8 }
 0x1f8   : > { %v823_v39 = vrot.slane %v1083_v32, 6  ;;  %v785_v40 = vmul.f32 %v778_v25, %v771_v34  ;;  %v786_v41 = vmul.f32 %v782_v30, %v772_v35  ;;  %v1060_v42 = vcombine.high %v860_v36, %v860_v36 }
 0x1f9   : > { %v1059_v43 = vcombine.low %v860_v36, %v860_v36 }
 0x1fa   : > { %825 = vst [vmem:[#allocation2 + $0x10] sm:$0xcc] %v823_v39  ;;  %v1082_v46 = vpack.c.bf16 %v786_v41, %v785_v40  ;;  %1061 = vmatprep.subr.msk.bf16.mxu1 %vm560_vm6, %v1060_v42  ;;  %v642_v47 = vpop.permute.xlu1 %641  ;;  %v611_v61 = vpop.permute.xlu0 %610 }
 0x1fb   : > { %v643_v48 = vsel %vm293_vm4, %v640_v27, %v642_v47  ;;  %v644_v49 = vsel %vm293_vm4, %v642_v47, %v640_v27  ;;  %v896_v50 = vsel %vm560_vm6, %v1059_v43, 0 }
 0x1fc   : > { %795 = vst [vmem:[#allocation2 + $0x10] sm:$0x33] %v1082_v46  ;;  %v657_v51 = vmul.f32 %v650_v37, %v644_v49  ;;  %v658_v52 = vmul.f32 %v654_v38, %v643_v48  ;;  %912 = vmatpush1.bf16.msra.mxu1 %v896_v50 }
 0x1fe   : > { %v1077_v56 = vpack.c.bf16 %v658_v52, %v657_v51  ;;  %v701_v57 = vpop.permute.xlu1 %700  ;;  %v670_v19 = vpop.permute.xlu0 %669 }
 0x1ff   : > { %v702_v58 = vsel %vm356_vm5, %v699_v45, %v701_v57  ;;  %v703_v59 = vsel %vm356_vm5, %v701_v57, %v699_v45 }
 0x200   : > { %v666_v62 = vrot.slane %v1077_v56, 6  ;;  %v716_v63 = vmul.f32 %v709_v53, %v703_v59  ;;  %v717_v2 = vmul.f32 %v713_v54, %v702_v58 }
 0x202   : > { %668 = vst [vmem:[#allocation2 + $0x8] sm:$0xcc] %v666_v62  ;;  %v1079_v5 = vpack.c.bf16 %v717_v2, %v716_v63  ;;  %v613_v6 = vpop.permute.xlu1 %612 }
 0x203   : > { %v614_v10 = vsel %vm263_vm7, %v611_v61, %v613_v6  ;;  %v615_v11 = vsel %vm263_vm7, %v613_v6, %v611_v61  ;;  %v1114_v13 = vld [vmem:[#allocation2 + $0x24] ss:$-16 sps:$4 sm:$0xff]   ;;  %v1116_v14 = vld [vmem:[#allocation2 + $0x20] ss:$-16 sps:$4 sm:$0xff]  }
 0x204   : > { %v725_v15 = vrot.slane %v1079_v5, 6  ;;  %v628_v16 = vmul.f32 %v621_v60, %v615_v11  ;;  %v629_v17 = vmul.f32 %v625_v3, %v614_v10  ;;  %913 = vmatprep.subr.bf16.mxu1 %v1114_v13 }
 0x205   : > { %914 = vmatpush1.bf16.msra.mxu1 %v1116_v14 }
 0x206   : > { %727 = vst [vmem:[#allocation2] sm:$0xcc] %v725_v15  ;;  %v1076_v20 = vpack.c.bf16 %v629_v17, %v628_v16  ;;  %v672_v21 = vpop.permute.xlu1 %671 }
 0x207   : > { %v673_v22 = vsel %vm325_vm8, %v670_v19, %v672_v21  ;;  %v674_v23 = vsel %vm325_vm8, %v672_v21, %v670_v19 }
 0x208   : > { %638 = vst [vmem:[#allocation2 + $0x8] sm:$0x33] %v1076_v20  ;;  %v687_v8 = vmul.f32 %v680_v12, %v674_v23  ;;  %v688_v24 = vmul.f32 %v684_v18, %v673_v22 }
 0x20a   : > { %v1078_v25 = vpack.c.bf16 %v688_v24, %v687_v8 }
 0x20b   : > { %v865_v28 = vpop.permute.xlu0 %864 }
 0x20c   : > { %697 = vst [vmem:[#allocation2] sm:$0x33] %v1078_v25 }
 0x213   : > { %v1117_v26 = vld [vmem:[#allocation2 + $0xc] ss:$-8 sps:$4 sm:$0xff]   ;;  %v1119_v27 = vld [vmem:[#allocation2 + $0x8] ss:$-8 sps:$4 sm:$0xff]  }
 0x214   : > { %915 = vmatprep.subr.bf16.mxu1 %v1117_v26 }
 0x215   : > { %916 = vmatpush1.bf16.msra.mxu1 %v1119_v27 }
 0x218   : > { %1062 = vmatmul.mubr.msk.bf16.vlgmr.msra.gmra.mxu1 %vm556_vm9, %v855_v9 }
 0x2d8   : > { %v935_v29 = vpop.f32.mrf.mxu1 }
 0x2d9   : > { %v936_v7 = vadd.f32 %v935_v29, %v865_v28 }
 0x2da   : > { %v937_v30 = vpop.f32.mrf.mxu1 }
 0x2db   : > { %v942_v31 = vadd.f32 %v936_v7, %v1188_v0  ;;  %v938_v32 = vadd.f32 %v937_v30, %v865_v28 }
 0x2dc   : > { %v939_v33 = vpop.f32.mrf.mxu1 }
 0x2dd   : > { %v943_v34 = vadd.f32 %v938_v32, %v1196_v1  ;;  %v944_v36 = vmax.f32 %v942_v31, 0.0 }
 0x2de   : > { %v940_v35 = vpop.f32.mrf.mxu1 }
 0x2df   : > { %v945_v37 = vmax.f32 %v943_v34, 0.0 }
 0x2e1   : > { %v948_v38 = vcombine.low %v944_v36, %v945_v37 }
 0x2e3   : > { %950 = vst [vmem:[%s251_s18] sm:$0xff] %v948_v38 }
 0x2e4 PF: > { %s16_s21 = sadd.s32 1, %s1126_s21  }
 0x2e5   : > { %p13_p4 = scmp.ge.s32.totalorder %s16_s21, 4  }
 0x2e7   :  { %15 = sbr.rel (!%p13_p4) target bundleno = 1 (0x1), region = 81 }

</bundles_post_ra>
